<compile_context>
chip_gen: v6e
topology: v6e:2x2x1
jax: 0.10.0
libtpu: 0.0.40
codegen_flags: <defaults>
</compile_context>

<pallas_src>
import math
import functools

import jax
import jax.numpy as jnp
from jax import lax
from jax.experimental import pallas as pl
from jax.experimental.pallas import tpu as pltpu


def _layernorm(x, w, b, eps=1e-5):
    # x: (rows, C) f32, w/b: (1, C). Matches torch.nn.LayerNorm (biased var).
    mean = jnp.mean(x, axis=-1, keepdims=True)
    xc = x - mean
    var = jnp.mean(xc * xc, axis=-1, keepdims=True)
    return xc * lax.rsqrt(var + eps) * w + b


# --------------------------------------------------------------------------
# Kernel 1: qkv = LN1(x) @ W_qkv + b_qkv   (W_qkv has the softmax scale
# pre-folded into its q columns; one big MXU GEMM per row tile).
# --------------------------------------------------------------------------
def ln_qkv_kernel(x_ref, ln1w_ref, ln1b_ref, w_ref, b_ref, o_ref):
    xn = _layernorm(x_ref[...].astype(jnp.float32), ln1w_ref[...], ln1b_ref[...])
    qkv = jnp.dot(xn.astype(w_ref.dtype), w_ref[...],
                  preferred_element_type=jnp.float32) + b_ref[...]
    o_ref[...] = qkv.astype(o_ref.dtype)


# --------------------------------------------------------------------------
# Kernel 2: per-(batch, query-tile) attention with the head axis as a
# reduction grid axis; the output projection is accumulated per head into a
# f32 scratch, then residual + LN2 + MLP + residual are fused on the last head.
# --------------------------------------------------------------------------
def attn_mlp_kernel(x_ref, q_ref, k_ref, v_ref,
                    pw_ref, pb_ref, g1_ref,
                    ln2w_ref, ln2b_ref,
                    f1w_ref, f1b_ref, f2w_ref, f2b_ref, g2_ref,
                    o_ref, acc_ref, *, num_heads):
    head = pl.program_id(2)

    @pl.when(head == 0)
    def _init():
        acc_ref[...] = jnp.zeros_like(acc_ref)

    q = q_ref[...]                      # (TQ, hd)  (already scaled)
    k = k_ref[...]                      # (N,  hd)
    v = v_ref[...]                      # (N,  hd)

    # scores = q @ k^T without an explicit transpose: contract last dims.
    s = lax.dot_general(q, k, (((1,), (1,)), ((), ())),
                        preferred_element_type=jnp.float32)      # (TQ, N)
    s = s - jnp.max(s, axis=-1, keepdims=True)
    p = jnp.exp(s)
    p = p * pl.reciprocal(jnp.sum(p, axis=-1, keepdims=True), approx=True)

    ctx = jnp.dot(p.astype(v.dtype), v,
                  preferred_element_type=jnp.float32)            # (TQ, hd)
    # concat_h(ctx_h) @ W_proj  ==  sum_h ctx_h @ W_proj[h*hd:(h+1)*hd, :]
    acc_ref[...] += jnp.dot(ctx.astype(pw_ref.dtype), pw_ref[...],
                            preferred_element_type=jnp.float32)  # (TQ, C)

    @pl.when(head == num_heads - 1)
    def _finalize():
        x = x_ref[...].astype(jnp.float32)                       # (TQ, C)
        attn_out = acc_ref[...] + pb_ref[...]
        x1 = x + g1_ref[...] * attn_out

        xn2 = _layernorm(x1, ln2w_ref[...], ln2b_ref[...])
        h1 = jnp.dot(xn2.astype(f1w_ref.dtype), f1w_ref[...],
                     preferred_element_type=jnp.float32) + f1b_ref[...]
        h1 = jax.nn.gelu(h1, approximate=False)   # exact erf GELU = nn.GELU()
        h2 = jnp.dot(h1.astype(f2w_ref.dtype), f2w_ref[...],
                     preferred_element_type=jnp.float32) + f2b_ref[...]

        o_ref[...] = (x1 + g2_ref[...] * h2).astype(o_ref.dtype)


# --------------------------------------------------------------------------
# Wrapper
# --------------------------------------------------------------------------
def block_forward(x, params, *, num_heads, q_tile=128, seq_tile=128,
                  compute_dtype=jnp.bfloat16):
    B, N, C = x.shape
    assert C % num_heads == 0
    hd = C // num_heads
    hidden = params["fc1_w"].shape[1]
    scale = hd ** -0.5
    cd = compute_dtype

    tq = min(q_tile, N)
    tn = min(seq_tile, N)
    # TODO(synk): pad N to a tile multiple and mask the padded KV columns in
    # the softmax for sequence lengths that are not a multiple of the tile.
    assert N % tq == 0 and N % tn == 0

    def row(p):
        return p.reshape(1, -1).astype(jnp.float32)

    # Fold the softmax scale into the q slice of the qkv weight & bias; cast
    # all matmul weights to the compute dtype (bf16 by default).
    qkv_w = jnp.concatenate(
        [params["qkv_w"][:, :C] * scale, params["qkv_w"][:, C:]],
        axis=1).astype(cd)                                      # (C, 3C)
    qkv_b = jnp.concatenate(
        [params["qkv_b"][:C] * scale, params["qkv_b"][C:]]
    ).reshape(1, -1).astype(jnp.float32)                        # (1, 3C)
    proj_w_heads = params["proj_w"].reshape(num_heads, hd, C).astype(cd)
    fc1_w = params["fc1_w"].astype(cd)
    fc2_w = params["fc2_w"].astype(cd)

    vmem_lim = 64 * 1024 * 1024

    # ---------------- pass 1: LN1 + QKV GEMM, row-tiled --------------------
    qkv = pl.pallas_call(
        ln_qkv_kernel,
        out_shape=jax.ShapeDtypeStruct((B, N, 3 * C), cd),
        grid=(B, N // tn),
        in_specs=[
            pl.BlockSpec((pl.Squeezed(), tn, C), lambda b, t: (b, t, 0)),
            pl.BlockSpec((1, C), lambda b, t: (0, 0)),
            pl.BlockSpec((1, C), lambda b, t: (0, 0)),
            pl.BlockSpec((C, 3 * C), lambda b, t: (0, 0)),
            pl.BlockSpec((1, 3 * C), lambda b, t: (0, 0)),
        ],
        out_specs=pl.BlockSpec((pl.Squeezed(), tn, 3 * C),
                               lambda b, t: (b, t, 0)),
        compiler_params=pltpu.CompilerParams(
            dimension_semantics=("parallel", "parallel"),
            vmem_limit_bytes=vmem_lim),
    )(x, row(params["ln1_w"]), row(params["ln1_b"]), qkv_w, qkv_b)

    # Head-major q/k/v layout (wrapper-side layout plumbing, plain XLA).
    qkv = qkv.reshape(B, N, 3, num_heads, hd)
    q = jnp.transpose(qkv[:, :, 0], (0, 2, 1, 3))   # (B, H, N, hd)
    k = jnp.transpose(qkv[:, :, 1], (0, 2, 1, 3))
    v = jnp.transpose(qkv[:, :, 2], (0, 2, 1, 3))

    # ---------------- pass 2: attention + proj + MLP -----------------------
    kernel = functools.partial(attn_mlp_kernel, num_heads=num_heads)

    out = pl.pallas_call(
        kernel,
        out_shape=jax.ShapeDtypeStruct((B, N, C), x.dtype),
        grid=(B, N // tq, num_heads),
        in_specs=[
            # residual input row tile
            pl.BlockSpec((pl.Squeezed(), tq, C), lambda b, qi, h: (b, qi, 0)),
            # q: (B, H, N, hd) -> (TQ, hd) tile of head h
            pl.BlockSpec((pl.Squeezed(), pl.Squeezed(), tq, hd),
                         lambda b, qi, h: (b, h, qi, 0)),
            # k, v: full sequence of head h
            pl.BlockSpec((pl.Squeezed(), pl.Squeezed(), N, hd),
                         lambda b, qi, h: (b, h, 0, 0)),
            pl.BlockSpec((pl.Squeezed(), pl.Squeezed(), N, hd),
                         lambda b, qi, h: (b, h, 0, 0)),
            # per-head slice of the output projection
            pl.BlockSpec((pl.Squeezed(), hd, C), lambda b, qi, h: (h, 0, 0)),
            pl.BlockSpec((1, C), lambda b, qi, h: (0, 0)),        # proj_b
            pl.BlockSpec((1, C), lambda b, qi, h: (0, 0)),        # gamma_1
            pl.BlockSpec((1, C), lambda b, qi, h: (0, 0)),        # ln2_w
            pl.BlockSpec((1, C), lambda b, qi, h: (0, 0)),        # ln2_b
            pl.BlockSpec((C, hidden), lambda b, qi, h: (0, 0)),   # fc1_w
            pl.BlockSpec((1, hidden), lambda b, qi, h: (0, 0)),   # fc1_b
            pl.BlockSpec((hidden, C), lambda b, qi, h: (0, 0)),   # fc2_w
            pl.BlockSpec((1, C), lambda b, qi, h: (0, 0)),        # fc2_b
            pl.BlockSpec((1, C), lambda b, qi, h: (0, 0)),        # gamma_2
        ],
        out_specs=pl.BlockSpec((pl.Squeezed(), tq, C),
                               lambda b, qi, h: (b, qi, 0)),
        scratch_shapes=[pltpu.VMEM((tq, C), jnp.float32)],
        compiler_params=pltpu.CompilerParams(
            dimension_semantics=("parallel", "parallel", "arbitrary"),
            vmem_limit_bytes=vmem_lim),
    )(x, q, k, v,
      proj_w_heads, row(params["proj_b"]), row(params["gamma_1"]),
      row(params["ln2_w"]), row(params["ln2_b"]),
      fc1_w, row(params["fc1_b"]), fc2_w, row(params["fc2_b"]),
      row(params["gamma_2"]))

    return out


# --------------------------------------------------------------------------
# Pure-JAX reference mirroring the PyTorch forward (eval mode).
# --------------------------------------------------------------------------
def block_reference(x, params, *, num_heads):
    B, N, C = x.shape
    hd = C // num_heads
    scale = hd ** -0.5
    eps = 1e-5

    def ln(v, w, b):
        m = jnp.mean(v, -1, keepdims=True)
        var = jnp.mean((v - m) ** 2, -1, keepdims=True)
        return (v - m) / jnp.sqrt(var + eps) * w + b

    xn1 = ln(x, params["ln1_w"], params["ln1_b"])
    qkv = xn1 @ params["qkv_w"] + params["qkv_b"]
    qkv = qkv.reshape(B, N, 3, num_heads, hd).transpose(2, 0, 3, 1, 4)
    q, k, v = qkv[0], qkv[1], qkv[2]
    att = jax.nn.softmax((q * scale) @ jnp.swapaxes(k, -2, -1), axis=-1)
    o = (att @ v).transpose(0, 2, 1, 3).reshape(B, N, C)
    o = o @ params["proj_w"] + params["proj_b"]
    x1 = x + params["gamma_1"] * o

    xn2 = ln(x1, params["ln2_w"], params["ln2_b"])
    h = jax.nn.gelu(xn2 @ params["fc1_w"] + params["fc1_b"], approximate=False)
    h = h @ params["fc2_w"] + params["fc2_b"]
    return x1 + params["gamma_2"] * h


if __name__ == "__main__":
    # Small but lane-friendly shapes (N, C, hidden all multiples of 128/tiles).
    B, N, dim = 2, 256, 128
    num_heads = 4
    mlp_ratio = 4.0
    hidden = int(dim * mlp_ratio)
    init_values = 0.1

    key = jax.random.PRNGKey(0)
    ks = jax.random.split(key, 12)

    def init(k, shape, fan_in):
        return jax.random.normal(k, shape, jnp.float32) / math.sqrt(fan_in)

    # qkv has no k-bias in the torch module: bias = cat(q_bias, zeros, v_bias)
    q_bias = init(ks[1], (dim,), dim)
    v_bias = init(ks[2], (dim,), dim)
    qkv_b = jnp.concatenate([q_bias, jnp.zeros((dim,), jnp.float32), v_bias])

    params = {
        "ln1_w": jnp.ones((dim,), jnp.float32),
        "ln1_b": jnp.zeros((dim,), jnp.float32),
        "qkv_w": init(ks[0], (dim, 3 * dim), dim),     # pre-transposed W^T
        "qkv_b": qkv_b,
        "proj_w": init(ks[3], (dim, dim), dim),        # pre-transposed W^T
        "proj_b": init(ks[4], (dim,), dim),
        "gamma_1": init_values * jnp.ones((dim,), jnp.float32),
        "ln2_w": jnp.ones((dim,), jnp.float32),
        "ln2_b": jnp.zeros((dim,), jnp.float32),
        "fc1_w": init(ks[5], (dim, hidden), dim),      # pre-transposed W^T
        "fc1_b": init(ks[6], (hidden,), dim),
        "fc2_w": init(ks[7], (hidden, dim), hidden),   # pre-transposed W^T
        "fc2_b": init(ks[8], (dim,), hidden),
        "gamma_2": init_values * jnp.ones((dim,), jnp.float32),
    }

    x = jax.random.normal(ks[9], (B, N, dim), jnp.float32)

    ref = block_reference(x, params, num_heads=num_heads)

    # f32 path: exact math except the approx softmax reciprocal.
    out_f32 = block_forward(x, params, num_heads=num_heads,
                            compute_dtype=jnp.float32)
    out_f32 = jax.block_until_ready(out_f32)
    assert out_f32.shape == (B, N, dim)
    err_f32 = float(jnp.max(jnp.abs(out_f32 - ref)))
    assert err_f32 < 1e-2, f"f32 path max err {err_f32}"

    # bf16 path: bf16 MXU operands with f32 accumulation (production mode).
    out_bf16 = block_forward(x, params, num_heads=num_heads,
                             compute_dtype=jnp.bfloat16)
    out_bf16 = jax.block_until_ready(out_bf16)
    err_bf16 = float(jnp.max(jnp.abs(out_bf16 - ref)))
    assert err_bf16 < 7.5e-2, f"bf16 path max err {err_bf16}"

    print("KERNEL_OK")
</pallas_src>

<mosaic_0001>
module attributes {stable_mosaic.version = 11 : i64} {
  func.func @ln_qkv_kernel(%arg0: i32, %arg1: i32, %arg2: memref<1x128x128xf32, #tpu.memory_space<vmem>>, %arg3: memref<1x128xf32, #tpu.memory_space<vmem>>, %arg4: memref<1x128xf32, #tpu.memory_space<vmem>>, %arg5: memref<128x384xf32, #tpu.memory_space<vmem>>, %arg6: memref<1x384xf32, #tpu.memory_space<vmem>>, %arg7: memref<1x128x384xf32, #tpu.memory_space<vmem>>) attributes {dimension_semantics = [#tpu.dimension_semantics<parallel>, #tpu.dimension_semantics<parallel>], iteration_bounds = array<i64: 2, 2>, scalar_prefetch = 0 : i64, scratch_operands = 0 : i64, tpu.core_type = #tpu.core_type<tc>, window_params = [{transform_indices = @transform_0, window_bounds = array<i64: 1, 128, 128>}, {pipeline_mode = #tpu.pipeline_mode<synchronous>, transform_indices = @transform_1, window_bounds = array<i64: 1, 128>}, {pipeline_mode = #tpu.pipeline_mode<synchronous>, transform_indices = @transform_2, window_bounds = array<i64: 1, 128>}, {pipeline_mode = #tpu.pipeline_mode<synchronous>, transform_indices = @transform_3, window_bounds = array<i64: 128, 384>}, {pipeline_mode = #tpu.pipeline_mode<synchronous>, transform_indices = @transform_4, window_bounds = array<i64: 1, 384>}, {transform_indices = @transform_5, window_bounds = array<i64: 1, 128, 384>}]} {
    %c0 = arith.constant 0 : index
    %c0_0 = arith.constant 0 : index
    %c0_1 = arith.constant 0 : index
    %0 = vector.load %arg2[%c0, %c0_0, %c0_1] : memref<1x128x128xf32, #tpu.memory_space<vmem>>, vector<1x128x128xf32>
    %1 = vector.shape_cast %0 : vector<1x128x128xf32> to vector<128x128xf32>
    %c0_2 = arith.constant 0 : index
    %c0_3 = arith.constant 0 : index
    %2 = vector.load %arg3[%c0_2, %c0_3] : memref<1x128xf32, #tpu.memory_space<vmem>>, vector<1x128xf32>
    %c0_4 = arith.constant 0 : index
    %c0_5 = arith.constant 0 : index
    %3 = vector.load %arg4[%c0_4, %c0_5] : memref<1x128xf32, #tpu.memory_space<vmem>>, vector<1x128xf32>
    %cst = arith.constant dense<0.000000e+00> : vector<128xf32>
    %4 = vector.multi_reduction <add>, %1, %cst [1] : vector<128x128xf32> to vector<128xf32>
    %5 = vector.shape_cast %4 : vector<128xf32> to vector<128x1xf32>
    %cst_6 = arith.constant 1.280000e+02 : f32
    %6 = vector.broadcast %cst_6 : f32 to vector<128x1xf32>
    %7 = arith.divf %5, %6 : vector<128x1xf32>
    %8 = vector.broadcast %7 : vector<128x1xf32> to vector<128x128xf32>
    %9 = arith.subf %1, %8 : vector<128x128xf32>
    %10 = arith.mulf %9, %9 : vector<128x128xf32>
    %cst_7 = arith.constant dense<0.000000e+00> : vector<128xf32>
    %11 = vector.multi_reduction <add>, %10, %cst_7 [1] : vector<128x128xf32> to vector<128xf32>
    %12 = vector.shape_cast %11 : vector<128xf32> to vector<128x1xf32>
    %cst_8 = arith.constant 1.280000e+02 : f32
    %13 = vector.broadcast %cst_8 : f32 to vector<128x1xf32>
    %14 = arith.divf %12, %13 : vector<128x1xf32>
    %cst_9 = arith.constant 9.99999974E-6 : f32
    %15 = vector.broadcast %cst_9 : f32 to vector<128x1xf32>
    %16 = arith.addf %14, %15 : vector<128x1xf32>
    %17 = math.rsqrt %16 : vector<128x1xf32>
    %18 = vector.broadcast %17 : vector<128x1xf32> to vector<128x128xf32>
    %19 = arith.mulf %9, %18 : vector<128x128xf32>
    %20 = vector.broadcast %2 : vector<1x128xf32> to vector<128x128xf32>
    %21 = arith.mulf %19, %20 : vector<128x128xf32>
    %22 = vector.broadcast %3 : vector<1x128xf32> to vector<128x128xf32>
    %23 = arith.addf %21, %22 : vector<128x128xf32>
    %c0_10 = arith.constant 0 : index
    %c0_11 = arith.constant 0 : index
    %24 = vector.load %arg5[%c0_10, %c0_11] : memref<128x384xf32, #tpu.memory_space<vmem>>, vector<128x384xf32>
    %cst_12 = arith.constant dense<0.000000e+00> : vector<128x384xf32>
    %25 = tpu.matmul %23, %24, %cst_12 {dimension_numbers = #tpu.dot_dimension_numbers<[1], [0], [0], [1], [0, 0, 1, 1], [], []>} : vector<128x128xf32>, vector<128x384xf32>, vector<128x384xf32> -> vector<128x384xf32>
    %c0_13 = arith.constant 0 : index
    %c0_14 = arith.constant 0 : index
    %26 = vector.load %arg6[%c0_13, %c0_14] : memref<1x384xf32, #tpu.memory_space<vmem>>, vector<1x384xf32>
    %27 = vector.broadcast %26 : vector<1x384xf32> to vector<128x384xf32>
    %28 = arith.addf %25, %27 : vector<128x384xf32>
    %c0_15 = arith.constant 0 : index
    %c0_16 = arith.constant 0 : index
    %c0_17 = arith.constant 0 : index
    %29 = vector.load %arg7[%c0_15, %c0_16, %c0_17] : memref<1x128x384xf32, #tpu.memory_space<vmem>>, vector<1x128x384xf32>
    %30 = vector.shape_cast %29 : vector<1x128x384xf32> to vector<128x384xf32>
    %31 = vector.shape_cast %28 : vector<128x384xf32> to vector<1x128x384xf32>
    tpu.vector_store %arg7[%c0_15, %c0_16, %c0_17], %31 {strides = array<i32>} : memref<1x128x384xf32, #tpu.memory_space<vmem>>, vector<1x128x384xf32>,
    return
  }
  func.func @transform_0(%arg0: i32, %arg1: i32) -> (i32, i32, i32) {
    %c0_i32 = arith.constant 0 : i32
    %c0_i32_0 = arith.constant 0 : i32
    return %arg0, %arg1, %c0_i32 : i32, i32, i32
  }
  func.func @transform_1(%arg0: i32, %arg1: i32) -> (i32, i32) {
    %c0_i32 = arith.constant 0 : i32
    %c0_i32_0 = arith.constant 0 : i32
    %c0_i32_1 = arith.constant 0 : i32
    return %c0_i32, %c0_i32_0 : i32, i32
  }
  func.func @transform_2(%arg0: i32, %arg1: i32) -> (i32, i32) {
    %c0_i32 = arith.constant 0 : i32
    %c0_i32_0 = arith.constant 0 : i32
    %c0_i32_1 = arith.constant 0 : i32
    return %c0_i32, %c0_i32_0 : i32, i32
  }
  func.func @transform_3(%arg0: i32, %arg1: i32) -> (i32, i32) {
    %c0_i32 = arith.constant 0 : i32
    %c0_i32_0 = arith.constant 0 : i32
    %c0_i32_1 = arith.constant 0 : i32
    return %c0_i32, %c0_i32_0 : i32, i32
  }
  func.func @transform_4(%arg0: i32, %arg1: i32) -> (i32, i32) {
    %c0_i32 = arith.constant 0 : i32
    %c0_i32_0 = arith.constant 0 : i32
    %c0_i32_1 = arith.constant 0 : i32
    return %c0_i32, %c0_i32_0 : i32, i32
  }
  func.func @transform_5(%arg0: i32, %arg1: i32) -> (i32, i32, i32) {
    %c0_i32 = arith.constant 0 : i32
    %c0_i32_0 = arith.constant 0 : i32
    return %arg0, %arg1, %c0_i32 : i32, i32, i32
  }
}

</mosaic_0001>

<bundles_post_ra>
// kernel: tpu_custom_call.1
= control target key start
LH: loop header
LB: loop body
LE: loop exit
PB: predicated region body
PF: predicated region fallthrough
CT: control target
= control target key end

     0   :  { %s1997_s0 = inlined_call_operand.hbm [shape: f32[2,256,128], index: 0, kind: input, shape index: {}]   ;;  %s1998_s1 = inlined_call_operand.vmem [shape: f32[1,128], index: 1, kind: input, shape index: {}]   ;;  %s1999_s2 = inlined_call_operand.vmem [shape: f32[1,128], index: 2, kind: input, shape index: {}]   ;;  %s2000_s3 = inlined_call_operand.hbm [shape: f32[128,384], index: 3, kind: input, shape index: {}]   ;;  %s2001_s4 = inlined_call_operand.vmem [shape: f32[1,384], index: 4, kind: input, shape index: {}]   ;;  %s2002_s5 = inlined_call_operand.hbm [shape: f32[2,256,384], index: 5, kind: output, shape index: {}]  }
   0x1   :  { %2011 = sst [smem:[#allocation16_spill]] %s2000_s3 }
   0x2   :  { %2012 = sst [smem:[#allocation17_spill]] %s2002_s5 }
   0x3   :  { %10 = vsyncpa [#allocation3], 0 }
   0x4   :  { %12 = vsyncpa [#allocation3 + $0x1], 0 }
   0x5   :  { %13 = vsyncpa [#allocation6], 0 }
   0x6   :  { %14 = vsyncpa [#allocation4], 0 }
   0x7   :  { %16 = vsyncpa [#allocation4 + $0x1], 0  ;;  %s1487_s18 = smov 0   ;;  %s1489_s19 = smov 0  }
   0x8   :  { %s1491_s20 = smov 0   ;;  %s1493_s21 = smov 0  }
   0x9   :  { %s1495_s22 = smov 0   ;;  %s1497_s23 = smov 0  }
   0xa   :  { %s1499_s24 = smov 0   ;;  %s1501_s25 = smov 0  }
   0xb LB: > { %2013 = sst [smem:[#allocation11_spill]] %s1417_s18  ;;  %s1053_s26 = sadd.s32 4294967295, %s1445_s25   ;;  %s1445_s25 = sphi %s1501_s25, %s22_s25   ;;  %s1441_s24 = sphi %s1499_s24, %s2040_s24   ;;  %s1437_s23 = sphi %s1497_s23, %s2035_s23   ;;  %s1433_s22 = sphi %s1495_s22, %s2039_s22   ;;  %s1429_s21 = sphi %s1493_s21, %s2034_s21   ;;  %s1425_s20 = sphi %s1491_s20, %s2038_s20   ;;  %s1421_s19 = sphi %s1489_s19, %s2037_s19   ;;  %s1417_s18 = sphi %s1487_s18, %s2036_s18  }
   0xc   : > { %2014 = sst [smem:[#allocation12_spill]] %s1437_s23  ;;  %s1054_s27 = sadd.s32 4294967294, %s1445_s25  }
   0xd   : > { %p56_p0 = scmp.ne.s32.totalorder %s1421_s19, %s1417_s18  ;;  %p1531_p1 = scmp.eq.s32.totalorder %s1053_s26, 0 }
   0xe   : > { %p1535_p2 = scmp.eq.s32.totalorder %s1053_s26, 3  ;;  %p172_p3 = scmp.eq.s32.totalorder %s1054_s27, 3 }
   0xf   : > { %p1541_p4 = por %p1531_p1, %p56_p0  ;;  %p1055_p5 = scmp.ge.s32.totalorder %s1445_s25, 1 }
  0x10   : > { %p1546_p6 = por %p172_p3, %p56_p0  ;;  %p179_p7 = scmp.lt.s32.totalorder %s1445_s25, 5 }
  0x11   : > { %s2017_s30 = scalar_select %p1541_p4, 1, 0 }
  0x12   : > { %s2018_s6 = scalar_select %p1546_p6, 1, 0 }
  0x13   : > { %p1551_p8 = pnand %p1055_p5, %p179_p7  ;;  %s1447_s8 = smov [#allocation5]  }
  0x14   : > { %2019 = sst [smem:[#allocation13_spill]] %s2018_s6  ;;  %s197_s9 = sshll.u32 %s1447_s8, 4  ;;  %s198_s9 = int_to_ptr.vmem [resolvable:$true] %s197_s9 }
  0x15   : > { %p1171_p9 = pneg %p1551_p8  ;;  %s1302_s10 = scalar_lea.vmem %s198_s9, 6144 }
  0x16   : > { %p1303_p12 = scmp.ne.s32.totalorder %s198_s9, %s1302_s10  ;;  %p1310_p3 = scmp.lt.s32.totalorder %s198_s9, %s198_s9 }
  0x17   : > { %p1172_p10 = pnand %p1171_p9, %p1531_p1  ;;  %p1311_p6 = scmp.lt.s32.totalorder %s1302_s10, %s1302_s10 }
  0x19   : > { %p1293_p11 = pneg %p1172_p10  ;;  %p1312_p4 = por %p1311_p6, %p1310_p3 }
  0x1b   : > { %p1305_p13 = pnand %p1303_p12, %p1293_p11 }
  0x1d   : > { %p1306_p0 = pneg %p1305_p13 }
  0x1f   : > { %p1313_p5 = pnand %p1312_p4, %p1306_p0 }
  0x21   : > { %1316 = shalt.err (!%p1313_p5)
}
  0x22   : > { %s1448_s11 = smov 384   ;;  %s1449_s12 = smov 24  }
  0x23   : > { %s2021_s3 = sld [smem:[#allocation16_spill]]  ;;  %s31_s15 = sadd.s32 1, %s1437_s23 }
  0x24   : > { %p32_p4 = scmp.ge.s32.totalorder %s31_s15, 2  ;;  %s34_s16 = sadd.s32 1, %s1441_s24 }
  0x25   : > { %s43_s17 = sadd.s32 1, %s1425_s20  ;;  %p50_p6 = scmp.ne.s32.totalorder %s1425_s20, %s1421_s19 }
  0x26   : > { %s2042_s15 = smov (%p32_p4, %s31_s15), 0  ;;  %s2044_s16 = smov (!%p32_p4, %s34_s16), %s1441_s24 }
  0x27   : > { %2022 = sst [smem:[#allocation14_spill]] %s2042_s15  ;;  %s39_s26 = ssub.s32 %s1437_s23, %s2042_s15 }
  0x28   : > { %p51_p7 = scmp.eq.s32.totalorder %s1445_s25, 0  ;;  %p36_p9 = scmp.ge.s32.totalorder %s2044_s16, 2 }
  0x29   : > { %1174 = dma.hbm_to_vmem [thread:$0]  (!%p1172_p10), %s2021_s3, 6144, %s198_s9, [#allocation6], %s1448_s11, %s1448_s11, %s1449_s12  }
  0x2a   : > { %p1575_p11 = por %p1535_p2, %p50_p6  ;;  %p1579_p10 = por %p51_p7, %p50_p6 }
  0x2b   : > { %p1184_p12 = scmp.lt.s32.totalorder %s1445_s25, 4  ;;  %s2046_s16 = smov (%p36_p9, %s2044_s16), 0 }
  0x2c   : > { %s2023_s27 = scalar_select %p1575_p11, 1, 0 }
  0x2d   : > { %s214_s9 = sand.u32 1, %s1425_s20   ;;  %s1059_s10 = sshll.u32 %s1437_s23, 4 }
  0x2e   : > { %2024 = sst [smem:[#allocation15_spill]] %s2023_s27  ;;  %s38_s11 = ssub.s32 %s1441_s24, %s2046_s16 }
  0x2f   : > { %s40_s12 = sor.u32 %s39_s26, %s38_s11  ;;  %s1058_s13 = sshll.u32 %s214_s9, 7 }
  0x30   : > { %p41_p13 = scmp.eq.s32.totalorder %s40_s12, 0  ;;  %s1060_s29 = sshll.u32 %s1441_s24, 5 }
  0x31   : > { %s218_s14 = scalar_lea.vmem [#allocation2], %s1058_s13  ;;  %s224_s6 = sadd.s32 %s1060_s29, %s1059_s10 }
  0x32   : > { %s227_s3 = sshll.u32 %s218_s14, 4  ;;  %s1061_s18 = sshll.u32 %s224_s6, 7  ;;  %s228_s3 = int_to_ptr.vmem [resolvable:$true] %s227_s3 }
  0x33   : > { %s1592_s15 = scalar_select %p41_p13, %s1425_s20, %s43_s17  }
  0x34   : > { %p1598_p2 = pnand %p1184_p12, %p1579_p10  ;;  %s226_s26 = scalar_lea.hbm %s1997_s0, %s1061_s18 }
  0x35   : > { %s215_s11 = scalar_lea.sflag [#allocation3], %s214_s9  ;;  %s1330_s12 = scalar_lea.vmem %s228_s3, 2048 }
  0x36   : > { %p1319_p0 = pneg %p1598_p2  ;;  %p1331_p3 = scmp.ne.s32.totalorder %s228_s3, %s1330_s12 }
  0x37   : > { %s1450_s17 = smov [#allocation2]  }
  0x38   : > { %p1333_p5 = pnand %p1331_p3, %p1319_p0  ;;  %s1335_s6 = sshll.u32 %s1450_s17, 4  ;;  %s1336_s6 = int_to_ptr.vmem [resolvable:$false] %s1335_s6 }
  0x39   : > { %s1337_s8 = scalar_lea.vmem %s1336_s6, 4096  ;;  %p1338_p6 = scmp.lt.s32.totalorder %s228_s3, %s1336_s6 }
  0x3a   : > { %p1334_p4 = pneg %p1333_p5  ;;  %p1339_p7 = scmp.lt.s32.totalorder %s1337_s8, %s1330_s12 }
  0x3c   : > { %p1340_p9 = por %p1339_p7, %p1338_p6 }
  0x3e   : > { %p1341_p10 = pnand %p1340_p9, %p1334_p4 }
  0x40   : > { %1344 = shalt.err (!%p1341_p10)
}
  0x41   : > { %s1451_s10 = smov 128   ;;  %s1452_s23 = smov 8  }
  0x42   : > { %1178 = dma.hbm_to_vmem [thread:$0]  (!%p1598_p2), %s226_s26, 2048, %s228_s3, %s215_s11, %s1451_s10, %s1451_s10, %s1452_s23  }
  0x43   : > { %239 = sbr.rel (%p1551_p8) target bundleno = 653 (0x28d), region = 40  ;;  %s1612_s18 = sand.u32 (!%p1551_p8), 1, %s1421_s19  }
  0x44   : > { %s1063_s27 = sshll.u32 (!%p1551_p8), %s1612_s18, 7  ;;  %s242_s9 = scalar_lea.sflag (!%p1551_p8), [#allocation3], %s1612_s18 }
  0x45   : > { %s1616_s13 = scalar_lea.vmem (!%p1551_p8), [#allocation2], %s1063_s27  ;;  %p2027_p12 = scmp.ne.s32.totalorder (!%p1551_p8), %s2017_s30, 0 }
  0x48   : > { %1404 = dma.done.wait (%p2027_p12), %s242_s9, 2048  }
  0x49   : > { %1406 = vsyncadd (%p2027_p12), %s242_s9, 4294965248 }
  0x4a   : > { %1408 = dma.done.wait (%p1531_p1), [#allocation6], 6144  }
  0x4b   : > { %1410 = vsyncadd (%p1531_p1), [#allocation6], 4294961152  ;;  %v278_v0 = vld [vmem:[%s1616_s13] sm:$0xff]  ;;  %v280_v1 = vld [vmem:[%s1616_s13 + $0x10] sm:$0xff]  ;;  %s1160_s14 = smul.u32 384, %s1612_s18  ;;  %s2029_s23 = sld [smem:[#allocation17_spill]] }
  0x4c   : > { %296 = vadd.xlane.f32.xlu0 %v278_v0  ;;  %300 = vadd.xlane.f32.xlu1 %v280_v1  ;;  %v279_v2 = vld [vmem:[%s1616_s13 + $0x8] sm:$0xff]  ;;  %v281_v3 = vld [vmem:[%s1616_s13 + $0x18] sm:$0xff]  ;;  %v1631_v4 = vld [vmem:[%s1616_s13 + $0x20] sm:$0xff]  ;;  %s1161_s11 = smul.u32 48, %s1429_s21  ;;  %s1454_s5 = smov [#allocation7]  }
  0x4d   : > { %v1634_v5 = vld [vmem:[%s1616_s13 + $0x28] sm:$0xff]  ;;  %v1639_v6 = vld [vmem:[%s1616_s13 + $0x30] sm:$0xff]  ;;  %v1642_v7 = vld [vmem:[%s1616_s13 + $0x38] sm:$0xff]  ;;  %s1839_s26 = scalar_lea.vmem [#allocation7], %s1160_s14  ;;  %s1162_s12 = smul.u32 96, %s1433_s22 }
  0x4e   : > { %v1647_v8 = vld [vmem:[%s1616_s13 + $0x40] sm:$0xff]  ;;  %v1650_v9 = vld [vmem:[%s1616_s13 + $0x48] sm:$0xff]  ;;  %v1655_v10 = vld [vmem:[%s1616_s13 + $0x50] sm:$0xff]  ;;  %s953_s6 = sshll.u32 %s1839_s26, 4  ;;  %s1349_s28 = sshll.u32 %s1454_s5, 4  ;;  %s1941_s6 = int_to_ptr.vmem [resolvable:$true] %s953_s6  ;;  %s1350_s28 = int_to_ptr.vmem [resolvable:$false] %s1349_s28 }
  0x4f   : > { %v1658_v11 = vld [vmem:[%s1616_s13 + $0x58] sm:$0xff]  ;;  %v1663_v12 = vld [vmem:[%s1616_s13 + $0x60] sm:$0xff]  ;;  %v1666_v13 = vld [vmem:[%s1616_s13 + $0x68] sm:$0xff]  ;;  %s950_s17 = sadd.s32 %s1162_s12, %s1161_s11  ;;  %s1345_s3 = scalar_lea.vmem %s1941_s6, 6144 }
  0x50   : > { %298 = vadd.xlane.f32.xlu0 %v279_v2  ;;  %302 = vadd.xlane.f32.xlu1 %v281_v3  ;;  %v1671_v14 = vld [vmem:[%s1616_s13 + $0x70] sm:$0xff]  ;;  %v1674_v15 = vld [vmem:[%s1616_s13 + $0x78] sm:$0xff]  ;;  %v562_v17 = vld [vmem:[#allocation5 + $0x168] sm:$0xff]  ;;  %s1069_s22 = sshll.u32 %s950_s17, 7  ;;  %s937_s13 = scalar_lea.sflag [#allocation4], %s1612_s18 }
  0x51   : > { %v563_v16 = vld [vmem:[#allocation5 + $0x170] sm:$0xff]  ;;  %v560_v18 = vld [vmem:[#allocation5 + $0x158] sm:$0xff]  ;;  %v557_v21 = vld [vmem:[#allocation5 + $0x140] sm:$0xff]  ;;  %s2030_s27 = smov %s2029_s23  ;;  %s1939_s9 = scalar_lea.hbm %s2029_s23, %s1069_s22 }
  0x52   : > { %582 = vmatprep.subr.mxu0 %v563_v16  ;;  %v559_v19 = vld [vmem:[#allocation5 + $0x150] sm:$0xff]  ;;  %v564_v20 = vld [vmem:[#allocation5 + $0x178] sm:$0xff]  ;;  %v561_v22 = vld [vmem:[#allocation5 + $0x160] sm:$0xff]  ;;  %p1346_p1 = scmp.ne.s32.totalorder %s1941_s6, %s1345_s3  ;;  %s1351_s30 = scalar_lea.vmem %s1350_s28, 12288 }
  0x53   : > { %583 = vmatpush1.msra.mxu0 %v562_v17  ;;  %1104 = vmatprep.subr.mxu1 %v564_v20  ;;  %v556_v23 = vld [vmem:[#allocation5 + $0x138] sm:$0xff]  ;;  %v554_v24 = vld [vmem:[#allocation5 + $0x128] sm:$0xff]  ;;  %v553_v25 = vld [vmem:[#allocation5 + $0x120] sm:$0xff]  ;;  %p1352_p2 = scmp.lt.s32.totalorder %s1941_s6, %s1350_s28  ;;  %p1353_p0 = scmp.lt.s32.totalorder %s1351_s30, %s1345_s3 }
  0x54   : > { %304 = vadd.xlane.f32.xlu0 %v1631_v4  ;;  %306 = vadd.xlane.f32.xlu1 %v1634_v5  ;;  %v551_v58 = vld [vmem:[#allocation5 + $0x110] sm:$0xff]  ;;  %v558_v59 = vld [vmem:[#allocation5 + $0x148] sm:$0xff]  ;;  %p1347_p8 = pnand %p1346_p1, %p1575_p11 }
  0x55   : > { %584 = vmatprep.subr.mxu0 %v560_v18  ;;  %1105 = vmatpush3.msra.mxu1 %v564_v20  ;;  %v550_v63 = vld [vmem:[#allocation5 + $0x108] sm:$0xff]  ;;  %p1354_p3 = por %p1353_p0, %p1352_p2 }
  0x56   : > { %585 = vmatpush1.msra.mxu0 %v559_v19  ;;  %1106 = vmatprep.subr.mxu1 %v561_v22  ;;  %v552_v19 = vld [vmem:[#allocation5 + $0x118] sm:$0xff]  ;;  %p1348_p13 = pneg %p1347_p8 }
  0x57   : > { %586 = vmatprep.subr.mxu0 %v557_v21  ;;  %1107 = vmatpush3.msra.mxu1 %v561_v22 }
  0x58   : > { %308 = vadd.xlane.f32.xlu0 %v1639_v6  ;;  %310 = vadd.xlane.f32.xlu1 %v1642_v7  ;;  %p1355_p5 = pnand %p1354_p3, %p1348_p13 }
  0x59   : > { %587 = vmatpush1.msra.mxu0 %v556_v23  ;;  %1108 = vmatprep.subr.mxu1 %v558_v59  ;;  %v542_v23 = vld [vmem:[#allocation5 + $0xc8] sm:$0xff] }
  0x5a   : > { %588 = vmatprep.subr.mxu0 %v554_v24  ;;  %1109 = vmatpush3.msra.mxu1 %v558_v59  ;;  %v549_v24 = vld [vmem:[#allocation5 + $0x100] sm:$0xff]  ;;  %v534_v59 = vld [vmem:[#allocation5 + $0x88] sm:$0xff] }
  0x5b   : > { %589 = vmatpush1.msra.mxu0 %v553_v25 }
  0x5c   : > { %312 = vadd.xlane.f32.xlu0 %v1647_v8  ;;  %314 = vadd.xlane.f32.xlu1 %v1650_v9 }
  0x5d   : > { %590 = vmatprep.subr.mxu0 %v551_v58  ;;  %v527_v58 = vld [vmem:[#allocation5 + $0x50] sm:$0xff] }
  0x5e   : > { %591 = vmatpush1.msra.mxu0 %v550_v63  ;;  %v523_v63 = vld [vmem:[#allocation5 + $0x30] sm:$0xff] }
  0x60   : > { %316 = vadd.xlane.f32.xlu0 %v1655_v10  ;;  %318 = vadd.xlane.f32.xlu1 %v1658_v11 }
  0x64   : > { %320 = vadd.xlane.f32.xlu0 %v1663_v12  ;;  %322 = vadd.xlane.f32.xlu1 %v1666_v13 }
  0x68   : > { %324 = vadd.xlane.f32.xlu0 %v1671_v14  ;;  %326 = vadd.xlane.f32.xlu1 %v1674_v15 }
  0xd5   : > { %v297_v26 = vpop.xlane.xlu0 %296  ;;  %v301_v27 = vpop.xlane.xlu1 %300 }
  0xd6   : > { %v329_v28 = vmul.f32 0.0078125, %v297_v26  ;;  %v331_v29 = vmul.f32 0.0078125, %v301_v27  ;;  %v541_v27 = vld [vmem:[#allocation5 + $0xc0] sm:$0xff] }
  0xd8   : > { %v1678_v30 = vsub.f32 %v278_v0, %v329_v28  ;;  %v1680_v31 = vsub.f32 %v280_v1, %v331_v29  ;;  %v548_v0 = vld [vmem:[#allocation5 + $0xf8] sm:$0xff]  ;;  %v555_v1 = vld [vmem:[#allocation5 + $0x130] sm:$0xff] }
  0xd9   : > { %v299_v32 = vpop.xlane.xlu0 %298  ;;  %v303_v33 = vpop.xlane.xlu1 %302  ;;  %592 = vmatprep.subr.mxu0 %v548_v0  ;;  %1110 = vmatprep.subr.mxu1 %v555_v1  ;;  %v521_v0 = vld [vmem:[#allocation5 + $0x20] sm:$0xff] }
  0xda   : > { %v330_v34 = vmul.f32 0.0078125, %v299_v32  ;;  %v361_v35 = vmul.f32 %v1678_v30, %v1678_v30  ;;  %v332_v36 = vmul.f32 0.0078125, %v303_v33  ;;  %v363_v39 = vmul.f32 %v1680_v31, %v1680_v31  ;;  %1111 = vmatpush3.msra.mxu1 %v555_v1  ;;  %v539_v32 = vld [vmem:[#allocation5 + $0xb0] sm:$0xff]  ;;  %v538_v33 = vld [vmem:[#allocation5 + $0xa8] sm:$0xff]  ;;  %v528_v1 = vld [vmem:[#allocation5 + $0x58] sm:$0xff] }
  0xdb   : > { %1112 = vmatprep.subr.mxu1 %v552_v19 }
  0xdc   : > { %v1684_v37 = vsub.f32 %v279_v2, %v330_v34  ;;  %377 = vadd.xlane.f32.xlu0 %v361_v35  ;;  %v1686_v38 = vsub.f32 %v281_v3, %v332_v36  ;;  %1113 = vmatpush3.msra.mxu1 %v552_v19 }
  0xdd   : > { %v305_v40 = vpop.xlane.xlu0 %304  ;;  %v307_v41 = vpop.xlane.xlu1 %306  ;;  %1114 = vmatprep.subr.mxu1 %v549_v24 }
  0xde   : > { %v333_v42 = vmul.f32 0.0078125, %v305_v40  ;;  %v362_v43 = vmul.f32 %v1684_v37, %v1684_v37  ;;  %v334_v44 = vmul.f32 0.0078125, %v307_v41  ;;  %v364_v47 = vmul.f32 %v1686_v38, %v1686_v38  ;;  %1115 = vmatpush3.msra.mxu1 %v549_v24  ;;  %v543_v40 = vld [vmem:[#allocation5 + $0xd0] sm:$0xff] }
  0xe0   : > { %v1693_v45 = vsub.f32 %v1631_v4, %v333_v42  ;;  %381 = vadd.xlane.f32.xlu0 %v363_v39  ;;  %379 = vadd.xlane.f32.xlu1 %v362_v43  ;;  %v1696_v46 = vsub.f32 %v1634_v5, %v334_v44  ;;  %v547_v5 = vld [vmem:[#allocation5 + $0xf0] sm:$0xff]  ;;  %v536_v39 = vld [vmem:[#allocation5 + $0x98] sm:$0xff] }
  0xe1   : > { %v309_v48 = vpop.xlane.xlu0 %308  ;;  %v311_v49 = vpop.xlane.xlu1 %310  ;;  %593 = vmatpush1.msra.mxu0 %v547_v5  ;;  %v518_v5 = vld [vmem:[#allocation5 + $0x8] sm:$0xff] }
  0xe2   : > { %v335_v50 = vmul.f32 0.0078125, %v309_v48  ;;  %v365_v51 = vmul.f32 %v1693_v45, %v1693_v45  ;;  %v336_v52 = vmul.f32 0.0078125, %v311_v49  ;;  %v366_v55 = vmul.f32 %v1696_v46, %v1696_v46  ;;  %v540_v48 = vld [vmem:[#allocation5 + $0xb8] sm:$0xff] }
  0xe4   : > { %v1703_v53 = vsub.f32 %v1639_v6, %v335_v50  ;;  %383 = vadd.xlane.f32.xlu1 %v364_v47  ;;  %385 = vadd.xlane.f32.xlu0 %v365_v51  ;;  %v1706_v54 = vsub.f32 %v1642_v7, %v336_v52  ;;  %v535_v47 = vld [vmem:[#allocation5 + $0x90] sm:$0xff]  ;;  %v532_v52 = vld [vmem:[#allocation5 + $0x78] sm:$0xff] }
  0xe5   : > { %v313_v56 = vpop.xlane.xlu0 %312  ;;  %v315_v57 = vpop.xlane.xlu1 %314 }
  0xe6   : > { %v337_v60 = vmul.f32 0.0078125, %v313_v56  ;;  %v367_v61 = vmul.f32 %v1703_v53, %v1703_v53  ;;  %v338_v62 = vmul.f32 0.0078125, %v315_v57  ;;  %v368_v4 = vmul.f32 %v1706_v54, %v1706_v54  ;;  %v530_v56 = vld [vmem:[#allocation5 + $0x68] sm:$0xff]  ;;  %v537_v57 = vld [vmem:[#allocation5 + $0xa0] sm:$0xff] }
  0xe8   : > { %v1713_v2 = vsub.f32 %v1647_v8, %v337_v60  ;;  %387 = vadd.xlane.f32.xlu1 %v366_v55  ;;  %389 = vadd.xlane.f32.xlu0 %v367_v61  ;;  %v1716_v3 = vsub.f32 %v1650_v9, %v338_v62  ;;  %v545_v8 = vld [vmem:[#allocation5 + $0xe0] sm:$0xff]  ;;  %v544_v9 = vld [vmem:[#allocation5 + $0xd8] sm:$0xff]  ;;  %v526_v60 = vld [vmem:[#allocation5 + $0x48] sm:$0xff] }
  0xe9   : > { %v317_v6 = vpop.xlane.xlu0 %316  ;;  %v319_v7 = vpop.xlane.xlu1 %318  ;;  %594 = vmatprep.subr.mxu0 %v545_v8  ;;  %v524_v61 = vld [vmem:[#allocation5 + $0x38] sm:$0xff]  ;;  %v531_v62 = vld [vmem:[#allocation5 + $0x70] sm:$0xff] }
  0xea   : > { %v339_v16 = vmul.f32 0.0078125, %v317_v6  ;;  %v369_v17 = vmul.f32 %v1713_v2, %v1713_v2  ;;  %v340_v18 = vmul.f32 0.0078125, %v319_v7  ;;  %v370_v22 = vmul.f32 %v1716_v3, %v1716_v3  ;;  %595 = vmatpush1.msra.mxu0 %v544_v9  ;;  %v525_v6 = vld [vmem:[#allocation5 + $0x40] sm:$0xff] }
  0xeb   : > { %596 = vmatprep.subr.mxu0 %v542_v23  ;;  %v517_v7 = vld [vmem:[#allocation5] sm:$0xff] }
  0xec   : > { %v1723_v20 = vsub.f32 %v1655_v10, %v339_v16  ;;  %391 = vadd.xlane.f32.xlu1 %v368_v4  ;;  %393 = vadd.xlane.f32.xlu0 %v369_v17  ;;  %v1726_v21 = vsub.f32 %v1658_v11, %v340_v18  ;;  %v546_v11 = vld [vmem:[#allocation5 + $0xe8] sm:$0xff]  ;;  %v520_v4 = vld [vmem:[#allocation5 + $0x18] sm:$0xff]  ;;  %v1453_v17 = vmov 0.0   ;;  %v519_v18 = vld [vmem:[#allocation5 + $0x10] sm:$0xff] }
  0xed   : > { %v321_v25 = vpop.xlane.xlu0 %320  ;;  %v323_v26 = vpop.xlane.xlu1 %322  ;;  %597 = vmatpush1.msra.mxu0 %v541_v27  ;;  %1116 = vmatprep.subr.mxu1 %v546_v11  ;;  %v522_v16 = vld [vmem:[#allocation5 + $0x28] sm:$0xff] }
  0xee   : > { %v341_v28 = vmul.f32 0.0078125, %v321_v25  ;;  %v371_v10 = vmul.f32 %v1723_v20, %v1723_v20  ;;  %v342_v29 = vmul.f32 0.0078125, %v323_v26  ;;  %v372_v36 = vmul.f32 %v1726_v21, %v1726_v21  ;;  %598 = vmatprep.subr.mxu0 %v539_v32  ;;  %1117 = vmatpush3.msra.mxu1 %v546_v11 }
  0xef   : > { %599 = vmatpush1.msra.mxu0 %v538_v33  ;;  %1118 = vmatprep.subr.mxu1 %v543_v40 }
  0xf0   : > { %v1733_v34 = vsub.f32 %v1663_v12, %v341_v28  ;;  %395 = vadd.xlane.f32.xlu1 %v370_v22  ;;  %397 = vadd.xlane.f32.xlu0 %v371_v10  ;;  %v1736_v35 = vsub.f32 %v1666_v13, %v342_v29  ;;  %v533_v13 = vld [vmem:[#allocation5 + $0x80] sm:$0xff] }
  0xf1   : > { %v325_v41 = vpop.xlane.xlu0 %324  ;;  %v327_v42 = vpop.xlane.xlu1 %326  ;;  %600 = vmatprep.subr.mxu0 %v536_v39  ;;  %1119 = vmatpush3.msra.mxu1 %v543_v40 }
  0xf2   : > { %v343_v43 = vmul.f32 0.0078125, %v325_v41  ;;  %v373_v44 = vmul.f32 %v1733_v34, %v1733_v34  ;;  %v344_v12 = vmul.f32 0.0078125, %v327_v42  ;;  %v374_v51 = vmul.f32 %v1736_v35, %v1736_v35  ;;  %601 = vmatpush1.msra.mxu0 %v535_v47  ;;  %1120 = vmatprep.subr.mxu1 %v540_v48 }
  0xf3   : > { %602 = vmatprep.subr.mxu0 %v533_v13  ;;  %1121 = vmatpush3.msra.mxu1 %v540_v48 }
  0xf4   : > { %v1743_v49 = vsub.f32 %v1671_v14, %v343_v43  ;;  %399 = vadd.xlane.f32.xlu1 %v372_v36  ;;  %401 = vadd.xlane.f32.xlu0 %v373_v44  ;;  %v1746_v50 = vsub.f32 %v1674_v15, %v344_v12  ;;  %v529_v14 = vld [vmem:[#allocation5 + $0x60] sm:$0xff] }
  0xf5   : > { %603 = vmatpush1.msra.mxu0 %v532_v52  ;;  %1122 = vmatprep.subr.mxu1 %v537_v57 }
  0xf6   : > { %v375_v55 = vmul.f32 %v1743_v49, %v1743_v49  ;;  %v376_v15 = vmul.f32 %v1746_v50, %v1746_v50  ;;  %604 = vmatprep.subr.mxu0 %v530_v56  ;;  %1123 = vmatpush3.msra.mxu1 %v537_v57 }
  0xf7   : > { %605 = vmatpush1.msra.mxu0 %v529_v14  ;;  %1124 = vmatprep.subr.mxu1 %v534_v59 }
  0xf8   : > { %403 = vadd.xlane.f32.xlu1 %v374_v51  ;;  %405 = vadd.xlane.f32.xlu0 %v375_v55  ;;  %v1758_v51 = vld [vmem:[%s1998_s1] ss:$0 sm:$0xff] }
  0xf9   : > { %606 = vmatprep.subr.mxu0 %v527_v58  ;;  %1125 = vmatpush3.msra.mxu1 %v534_v59 }
  0xfa   : > { %607 = vmatpush1.msra.mxu0 %v526_v60  ;;  %1126 = vmatprep.subr.mxu1 %v531_v62 }
  0xfb   : > { %608 = vmatprep.subr.mxu0 %v524_v61  ;;  %1127 = vmatpush3.msra.mxu1 %v531_v62 }
  0xfc   : > { %407 = vadd.xlane.f32.xlu1 %v376_v15  ;;  %609 = vmatpush1.msra.mxu0 %v523_v63  ;;  %v1764_v15 = vld [vmem:[%s1999_s2] ss:$0 sm:$0xff] }
  0xfd   : > { %610 = vmatprep.subr.mxu0 %v521_v0  ;;  %1128 = vmatprep.subr.mxu1 %v528_v1 }
  0xfe   : > { %611 = vmatpush1.msra.mxu0 %v520_v4  ;;  %1129 = vmatpush3.msra.mxu1 %v528_v1 }
  0xff   : > { %612 = vmatprep.subr.mxu0 %v518_v5  ;;  %1130 = vmatprep.subr.mxu1 %v525_v6 }
 0x100   : > { %613 = vmatpush1.msra.mxu0 %v517_v7  ;;  %646 = vmatprep.mubr.f32.mxu0 %v1453_v17 }
 0x101   : > { %1131 = vmatpush3.msra.mxu1 %v525_v6 }
 0x102   : > { %1132 = vmatprep.subr.mxu1 %v522_v16 }
 0x103   : > { %1133 = vmatpush3.msra.mxu1 %v522_v16 }
 0x104   : > { %1134 = vmatprep.subr.mxu1 %v519_v18 }
 0x105   : > { %1135 = vmatpush3.msra.mxu1 %v519_v18 }
 0x165   : > { %v378_v8 = vpop.xlane.xlu0 %377 }
 0x166   : > { %v409_v19 = vmul.f32 0.0078125, %v378_v8 }
 0x168   : > { %v425_v9 = vadd.f32 1e-05, %v409_v19 }
 0x169   : > { %v380_v22 = vpop.xlane.xlu1 %379  ;;  %v382_v23 = vpop.xlane.xlu0 %381 }
 0x16a   : > { %1259 = vrsqrt.f32 %v425_v9  ;;  %v410_v24 = vmul.f32 0.0078125, %v380_v22  ;;  %v411_v25 = vmul.f32 0.0078125, %v382_v23 }
 0x16c   : > { %v426_v26 = vadd.f32 1e-05, %v410_v24  ;;  %v427_v27 = vadd.f32 1e-05, %v411_v25 }
 0x16d   : > { %v384_v28 = vpop.xlane.xlu1 %383  ;;  %v386_v10 = vpop.xlane.xlu0 %385 }
 0x16e   : > { %1261 = vrsqrt.f32 %v426_v26  ;;  %v412_v29 = vmul.f32 0.0078125, %v384_v28  ;;  %v413_v32 = vmul.f32 0.0078125, %v386_v10 }
 0x16f   : > { %1263 = vrsqrt.f32 %v427_v27 }
 0x170   : > { %v428_v11 = vadd.f32 1e-05, %v412_v29  ;;  %v429_v33 = vadd.f32 1e-05, %v413_v32 }
 0x171   : > { %v388_v36 = vpop.xlane.xlu1 %387  ;;  %v390_v39 = vpop.xlane.xlu0 %389 }
 0x172   : > { %1265 = vrsqrt.f32 %v428_v11  ;;  %v414_v40 = vmul.f32 0.0078125, %v388_v36  ;;  %v415_v41 = vmul.f32 0.0078125, %v390_v39 }
 0x173   : > { %1267 = vrsqrt.f32 %v429_v33 }
 0x174   : > { %v430_v42 = vadd.f32 1e-05, %v414_v40  ;;  %v431_v43 = vadd.f32 1e-05, %v415_v41 }
 0x175   : > { %v392_v44 = vpop.xlane.xlu1 %391  ;;  %v394_v12 = vpop.xlane.xlu0 %393 }
 0x176   : > { %1269 = vrsqrt.f32 %v430_v42  ;;  %v416_v47 = vmul.f32 0.0078125, %v392_v44  ;;  %v417_v13 = vmul.f32 0.0078125, %v394_v12 }
 0x177   : > { %v1260_v48 = vpop.eup %1259  ;;  %1271 = vrsqrt.f32 %v431_v43 }
 0x178   : > { %v432_v52 = vadd.f32 1e-05, %v416_v47  ;;  %v433_v55 = vadd.f32 1e-05, %v417_v13  ;;  %v457_v56 = vmul.f32 %v1260_v48, %v1678_v30 }
 0x179   : > { %v396_v57 = vpop.xlane.xlu1 %395  ;;  %v398_v14 = vpop.xlane.xlu0 %397 }
 0x17a   : > { %1273 = vrsqrt.f32 %v432_v52  ;;  %v418_v58 = vmul.f32 0.0078125, %v396_v57  ;;  %v419_v59 = vmul.f32 0.0078125, %v398_v14  ;;  %v479_v60 = vmul.f32 %v1758_v51, %v457_v56 }
 0x17b   : > { %v1262_v61 = vpop.eup %1261  ;;  %1275 = vrsqrt.f32 %v433_v55 }
 0x17c   : > { %v1264_v62 = vpop.eup %1263  ;;  %v434_v63 = vadd.f32 1e-05, %v418_v58  ;;  %v435_v0 = vadd.f32 1e-05, %v419_v59  ;;  %v501_v1 = vadd.f32 %v1764_v15, %v479_v60  ;;  %v458_v30 = vmul.f32 %v1262_v61, %v1684_v37 }
 0x17d   : > { %v400_v4 = vpop.xlane.xlu1 %399  ;;  %v402_v5 = vpop.xlane.xlu0 %401  ;;  %v459_v6 = vmul.f32 %v1264_v62, %v1680_v31 }
 0x17e   : > { %1277 = vrsqrt.f32 %v434_v63  ;;  %v420_v7 = vmul.f32 0.0078125, %v400_v4  ;;  %v421_v16 = vmul.f32 0.0078125, %v402_v5  ;;  %647 = vmatmul.mubr.f32.vlgmr.msra.gmra.mxu0 %v501_v1  ;;  %1136 = vmatprep.mubr.f32.mxu1 %v501_v1  ;;  %v480_v18 = vmul.f32 %v1758_v51, %v458_v30 }
 0x17f   : > { %v1266_v8 = vpop.eup %1265  ;;  %1279 = vrsqrt.f32 %v435_v0  ;;  %652 = vmatprep.mubr.f32.mxu0 %v1453_v17  ;;  %v481_v19 = vmul.f32 %v1758_v51, %v459_v6 }
 0x180   : > { %v1268_v9 = vpop.eup %1267  ;;  %v436_v22 = vadd.f32 1e-05, %v420_v7  ;;  %v437_v37 = vadd.f32 1e-05, %v421_v16  ;;  %v502_v23 = vadd.f32 %v1764_v15, %v480_v18  ;;  %v460_v31 = vmul.f32 %v1266_v8, %v1686_v38 }
 0x181   : > { %v404_v24 = vpop.xlane.xlu1 %403  ;;  %v406_v25 = vpop.xlane.xlu0 %405  ;;  %v503_v26 = vadd.f32 %v1764_v15, %v481_v19  ;;  %v461_v27 = vmul.f32 %v1268_v9, %v1693_v45 }
 0x182   : > { %1281 = vrsqrt.f32 %v436_v22  ;;  %v422_v28 = vmul.f32 0.0078125, %v404_v24  ;;  %v423_v10 = vmul.f32 0.0078125, %v406_v25  ;;  %653 = vmatmul.mubr.f32.gmra.mxu0 %v502_v23  ;;  %1137 = vmatmul.mubr.f32.vlgmr.msra.gmra.mxu1 %v502_v23  ;;  %v482_v29 = vmul.f32 %v1758_v51, %v460_v31  ;;  %v565_v31 = vld [vmem:[%s2001_s4] sm:$0x7] }
 0x183   : > { %v1270_v32 = vpop.eup %1269  ;;  %1283 = vrsqrt.f32 %v437_v37  ;;  %1139 = vmatprep.mubr.f32.mxu1 %v503_v26  ;;  %658 = vmatprep.mubr.f32.mxu0 %v1453_v17  ;;  %v483_v38 = vmul.f32 %v1758_v51, %v461_v27 }
 0x184   : > { %v1272_v11 = vpop.eup %1271  ;;  %v438_v33 = vadd.f32 1e-05, %v422_v28  ;;  %v439_v36 = vadd.f32 1e-05, %v423_v10  ;;  %v504_v39 = vadd.f32 %v1764_v15, %v482_v29  ;;  %v462_v45 = vmul.f32 %v1270_v32, %v1696_v46 }
 0x185   : > { %v408_v40 = vpop.xlane.xlu1 %407  ;;  %v505_v41 = vadd.f32 %v1764_v15, %v483_v38  ;;  %v463_v42 = vmul.f32 %v1272_v11, %v1703_v53 }
 0x186   : > { %1285 = vrsqrt.f32 %v438_v33  ;;  %v424_v43 = vmul.f32 0.0078125, %v408_v40  ;;  %659 = vmatmul.mubr.f32.gmra.mxu0 %v503_v26  ;;  %1140 = vmatmul.mubr.f32.gmra.mxu1 %v504_v39  ;;  %v484_v44 = vmul.f32 %v1758_v51, %v462_v45 }
 0x187   : > { %v1274_v12 = vpop.eup %1273  ;;  %1287 = vrsqrt.f32 %v439_v36  ;;  %1142 = vmatprep.mubr.f32.mxu1 %v505_v41  ;;  %664 = vmatprep.mubr.f32.mxu0 %v1453_v17  ;;  %v485_v47 = vmul.f32 %v1758_v51, %v463_v42 }
 0x188   : > { %v1276_v13 = vpop.eup %1275  ;;  %v440_v46 = vadd.f32 1e-05, %v424_v43  ;;  %v506_v48 = vadd.f32 %v1764_v15, %v484_v44  ;;  %v464_v52 = vmul.f32 %v1274_v12, %v1706_v54 }
 0x189   : > { %v507_v53 = vadd.f32 %v1764_v15, %v485_v47  ;;  %v465_v55 = vmul.f32 %v1276_v13, %v1713_v2 }
 0x18a   : > { %1289 = vrsqrt.f32 %v440_v46  ;;  %665 = vmatmul.mubr.f32.gmra.mxu0 %v504_v39  ;;  %1143 = vmatmul.mubr.f32.gmra.mxu1 %v506_v48  ;;  %v486_v56 = vmul.f32 %v1758_v51, %v464_v52 }
 0x18b   : > { %v1278_v57 = vpop.eup %1277  ;;  %1145 = vmatprep.mubr.f32.mxu1 %v507_v53  ;;  %670 = vmatprep.mubr.f32.mxu0 %v1453_v17  ;;  %v487_v14 = vmul.f32 %v1758_v51, %v465_v55 }
 0x18c   : > { %v1280_v58 = vpop.eup %1279  ;;  %v508_v59 = vadd.f32 %v1764_v15, %v486_v56  ;;  %v466_v54 = vmul.f32 %v1278_v57, %v1716_v3 }
 0x18d   : > { %v509_v60 = vadd.f32 %v1764_v15, %v487_v14  ;;  %v467_v2 = vmul.f32 %v1280_v58, %v1723_v20 }
 0x18e   : > { %671 = vmatmul.mubr.f32.gmra.mxu0 %v505_v41  ;;  %1146 = vmatmul.mubr.f32.gmra.mxu1 %v508_v59  ;;  %v488_v61 = vmul.f32 %v1758_v51, %v466_v54 }
 0x18f   : > { %v1282_v62 = vpop.eup %1281  ;;  %1148 = vmatprep.mubr.f32.mxu1 %v509_v60  ;;  %676 = vmatprep.mubr.f32.mxu0 %v1453_v17  ;;  %v489_v63 = vmul.f32 %v1758_v51, %v467_v2 }
 0x190   : > { %v1284_v0 = vpop.eup %1283  ;;  %v510_v1 = vadd.f32 %v1764_v15, %v488_v61  ;;  %v468_v30 = vmul.f32 %v1282_v62, %v1726_v21 }
 0x191   : > { %v511_v3 = vadd.f32 %v1764_v15, %v489_v63  ;;  %v469_v4 = vmul.f32 %v1284_v0, %v1733_v34 }
 0x192   : > { %677 = vmatmul.mubr.f32.gmra.mxu0 %v506_v48  ;;  %1149 = vmatmul.mubr.f32.gmra.mxu1 %v510_v1  ;;  %v490_v20 = vmul.f32 %v1758_v51, %v468_v30 }
 0x193   : > { %v1286_v5 = vpop.eup %1285  ;;  %1151 = vmatprep.mubr.f32.mxu1 %v511_v3  ;;  %682 = vmatprep.mubr.f32.mxu0 %v1453_v17  ;;  %v491_v6 = vmul.f32 %v1758_v51, %v469_v4 }
 0x194   : > { %v1288_v7 = vpop.eup %1287  ;;  %v512_v16 = vadd.f32 %v1764_v15, %v490_v20  ;;  %v470_v18 = vmul.f32 %v1286_v5, %v1736_v35 }
 0x195   : > { %v513_v21 = vadd.f32 %v1764_v15, %v491_v6  ;;  %v471_v8 = vmul.f32 %v1288_v7, %v1743_v49 }
 0x196   : > { %683 = vmatmul.mubr.f32.gmra.mxu0 %v507_v53  ;;  %1152 = vmatmul.mubr.f32.gmra.mxu1 %v512_v16  ;;  %v492_v34 = vmul.f32 %v1758_v51, %v470_v18 }
 0x197   : > { %v1290_v19 = vpop.eup %1289  ;;  %1154 = vmatprep.mubr.f32.mxu1 %v513_v21  ;;  %688 = vmatprep.mubr.f32.mxu0 %v1453_v17  ;;  %v493_v9 = vmul.f32 %v1758_v51, %v471_v8 }
 0x198   : > { %v514_v22 = vadd.f32 %v1764_v15, %v492_v34  ;;  %v472_v37 = vmul.f32 %v1290_v19, %v1746_v50  ;;  %v567_v50 = vlaneseq }
 0x199   : > { %v515_v35 = vadd.f32 %v1764_v15, %v493_v9 }
 0x19a   : > { %689 = vmatmul.mubr.f32.gmra.mxu0 %v508_v59  ;;  %1155 = vmatmul.mubr.f32.gmra.mxu1 %v514_v22  ;;  %v494_v49 = vmul.f32 %v1758_v51, %v472_v37  ;;  %v568_v51 = vshrl.u32 %v567_v50, 7 }
 0x19b   : > { %1157 = vmatprep.mubr.f32.mxu1 %v515_v35  ;;  %694 = vmatprep.mubr.f32.mxu0 %v1453_v17 }
 0x19c   : > { %v516_v23 = vadd.f32 %v1764_v15, %v494_v49  ;;  %v569_v15 = vsub.s32 0, %v568_v51  ;;  %v573_v24 = vsub.s32 1, %v568_v51  ;;  %v577_v26 = vsub.s32 2, %v568_v51 }
 0x19e   : > { %695 = vmatmul.mubr.f32.gmra.mxu0 %v509_v60  ;;  %1158 = vmatmul.mubr.f32.gmra.mxu1 %v516_v23  ;;  %v1832_v25 = vrot.slane %v565_v31, %v569_v15  ;;  %v1834_v27 = vrot.slane %v565_v31, %v573_v24  ;;  %v1837_v29 = vrot.slane %v565_v31, %v577_v26 }
 0x19f   : > { %700 = vmatprep.mubr.f32.mxu0 %v1453_v17 }
 0x1a2   : > { %701 = vmatmul.mubr.f32.gmra.mxu0 %v510_v1 }
 0x1a3   : > { %706 = vmatprep.mubr.f32.mxu0 %v1453_v17 }
 0x1a6   : > { %707 = vmatmul.mubr.f32.gmra.mxu0 %v511_v3 }
 0x1a7   : > { %712 = vmatprep.mubr.f32.mxu0 %v1453_v17 }
 0x1aa   : > { %713 = vmatmul.mubr.f32.gmra.mxu0 %v512_v16 }
 0x1ab   : > { %718 = vmatprep.mubr.f32.mxu0 %v1453_v17 }
 0x1ae   : > { %719 = vmatmul.mubr.f32.gmra.mxu0 %v513_v21 }
 0x1af   : > { %724 = vmatprep.mubr.f32.mxu0 %v1453_v17 }
 0x1b2   : > { %725 = vmatmul.mubr.f32.gmra.mxu0 %v514_v22 }
 0x1b3   : > { %730 = vmatprep.mubr.f32.mxu0 %v1453_v17 }
 0x1b6   : > { %731 = vmatmul.mubr.f32.gmra.mxu0 %v515_v35 }
 0x1b7   : > { %736 = vmatprep.mubr.f32.mxu0 %v1453_v17 }
 0x1ba   : > { %737 = vmatmul.mubr.f32.gmra.mxu0 %v516_v23 }
 0x23e   : > { %v648_v28 = vpop.f32.mrf.mxu0 }
 0x23f   : > { %v649_v10 = vadd.f32 %v648_v28, %v1832_v25 }
 0x240   : > { %v650_v17 = vpop.f32.mrf.mxu0 }
 0x241   : > { %888 = vst [vmem:[%s1839_s26] sm:$0xff] %v649_v10  ;;  %v651_v32 = vadd.f32 %v650_v17, %v1834_v27 }
 0x242   : > { %v654_v38 = vpop.f32.mrf.mxu0  ;;  %v1138_v11 = vpop.f32.mrf.mxu1 }
 0x243   : > { %889 = vst [vmem:[%s1839_s26 + $0x8] sm:$0xff] %v651_v32  ;;  %v655_v33 = vadd.f32 %v654_v38, %v1832_v25  ;;  %v815_v36 = vadd.f32 %v1138_v11, %v1837_v29 }
 0x244   : > { %v656_v39 = vpop.f32.mrf.mxu0  ;;  %v809_v45 = vpop.f32.mrf.mxu1 }
 0x245   : > { %891 = vst [vmem:[%s1839_s26 + $0x18] sm:$0xff] %v655_v33  ;;  %893 = vst [vmem:[%s1839_s26 + $0x28] sm:$0xff] %v815_v36  ;;  %v657_v40 = vadd.f32 %v656_v39, %v1834_v27  ;;  %v810_v41 = vadd.f32 %v809_v45, %v1837_v29 }
 0x246   : > { %v660_v42 = vpop.f32.mrf.mxu0  ;;  %v1141_v43 = vpop.f32.mrf.mxu1 }
 0x247   : > { %892 = vst [vmem:[%s1839_s26 + $0x20] sm:$0xff] %v657_v40  ;;  %890 = vst [vmem:[%s1839_s26 + $0x10] sm:$0xff] %v810_v41  ;;  %v661_v44 = vadd.f32 %v660_v42, %v1832_v25  ;;  %v825_v12 = vadd.f32 %v1141_v43, %v1837_v29 }
 0x248   : > { %v662_v47 = vpop.f32.mrf.mxu0  ;;  %v819_v13 = vpop.f32.mrf.mxu1 }
 0x249   : > { %894 = vst [vmem:[%s1839_s26 + $0x30] sm:$0xff] %v661_v44  ;;  %899 = vst [vmem:[%s1839_s26 + $0x58] sm:$0xff] %v825_v12  ;;  %v663_v46 = vadd.f32 %v662_v47, %v1834_v27  ;;  %v820_v48 = vadd.f32 %v819_v13, %v1837_v29 }
 0x24a   : > { %v666_v52 = vpop.f32.mrf.mxu0  ;;  %v1144_v53 = vpop.f32.mrf.mxu1 }
 0x24b   : > { %895 = vst [vmem:[%s1839_s26 + $0x38] sm:$0xff] %v663_v46  ;;  %896 = vst [vmem:[%s1839_s26 + $0x40] sm:$0xff] %v820_v48  ;;  %v667_v55 = vadd.f32 %v666_v52, %v1832_v25  ;;  %v835_v56 = vadd.f32 %v1144_v53, %v1837_v29 }
 0x24c   : > { %v668_v57 = vpop.f32.mrf.mxu0  ;;  %v829_v14 = vpop.f32.mrf.mxu1 }
 0x24d   : > { %897 = vst [vmem:[%s1839_s26 + $0x48] sm:$0xff] %v667_v55  ;;  %905 = vst [vmem:[%s1839_s26 + $0x88] sm:$0xff] %v835_v56  ;;  %v669_v58 = vadd.f32 %v668_v57, %v1834_v27  ;;  %v830_v59 = vadd.f32 %v829_v14, %v1837_v29 }
 0x24e   : > { %v672_v54 = vpop.f32.mrf.mxu0  ;;  %v1147_v60 = vpop.f32.mrf.mxu1 }
 0x24f   : > { %898 = vst [vmem:[%s1839_s26 + $0x50] sm:$0xff] %v669_v58  ;;  %902 = vst [vmem:[%s1839_s26 + $0x70] sm:$0xff] %v830_v59  ;;  %v673_v2 = vadd.f32 %v672_v54, %v1832_v25  ;;  %v845_v61 = vadd.f32 %v1147_v60, %v1837_v29 }
 0x250   : > { %v674_v62 = vpop.f32.mrf.mxu0  ;;  %v839_v63 = vpop.f32.mrf.mxu1 }
 0x251   : > { %900 = vst [vmem:[%s1839_s26 + $0x60] sm:$0xff] %v673_v2  ;;  %911 = vst [vmem:[%s1839_s26 + $0xb8] sm:$0xff] %v845_v61  ;;  %v675_v0 = vadd.f32 %v674_v62, %v1834_v27  ;;  %v840_v1 = vadd.f32 %v839_v63, %v1837_v29 }
 0x252   : > { %v678_v30 = vpop.f32.mrf.mxu0  ;;  %v1150_v3 = vpop.f32.mrf.mxu1 }
 0x253   : > { %901 = vst [vmem:[%s1839_s26 + $0x68] sm:$0xff] %v675_v0  ;;  %908 = vst [vmem:[%s1839_s26 + $0xa0] sm:$0xff] %v840_v1  ;;  %v679_v4 = vadd.f32 %v678_v30, %v1832_v25  ;;  %v855_v20 = vadd.f32 %v1150_v3, %v1837_v29 }
 0x254   : > { %v680_v5 = vpop.f32.mrf.mxu0  ;;  %v849_v6 = vpop.f32.mrf.mxu1 }
 0x255   : > { %903 = vst [vmem:[%s1839_s26 + $0x78] sm:$0xff] %v679_v4  ;;  %917 = vst [vmem:[%s1839_s26 + $0xe8] sm:$0xff] %v855_v20  ;;  %v681_v7 = vadd.f32 %v680_v5, %v1834_v27  ;;  %v850_v16 = vadd.f32 %v849_v6, %v1837_v29 }
 0x256   : > { %v684_v18 = vpop.f32.mrf.mxu0  ;;  %v1153_v21 = vpop.f32.mrf.mxu1 }
 0x257   : > { %904 = vst [vmem:[%s1839_s26 + $0x80] sm:$0xff] %v681_v7  ;;  %914 = vst [vmem:[%s1839_s26 + $0xd0] sm:$0xff] %v850_v16  ;;  %v685_v8 = vadd.f32 %v684_v18, %v1832_v25  ;;  %v865_v34 = vadd.f32 %v1153_v21, %v1837_v29 }
 0x258   : > { %v686_v19 = vpop.f32.mrf.mxu0  ;;  %v859_v9 = vpop.f32.mrf.mxu1 }
 0x259   : > { %906 = vst [vmem:[%s1839_s26 + $0x90] sm:$0xff] %v685_v8  ;;  %923 = vst [vmem:[%s1839_s26 + $0x118] sm:$0xff] %v865_v34  ;;  %v687_v22 = vadd.f32 %v686_v19, %v1834_v27  ;;  %v860_v37 = vadd.f32 %v859_v9, %v1837_v29 }
 0x25a   : > { %v690_v35 = vpop.f32.mrf.mxu0  ;;  %v1156_v49 = vpop.f32.mrf.mxu1 }
 0x25b   : > { %907 = vst [vmem:[%s1839_s26 + $0x98] sm:$0xff] %v687_v22  ;;  %920 = vst [vmem:[%s1839_s26 + $0x100] sm:$0xff] %v860_v37  ;;  %v691_v23 = vadd.f32 %v690_v35, %v1832_v25  ;;  %v875_v50 = vadd.f32 %v1156_v49, %v1837_v29 }
 0x25c   : > { %v692_v51 = vpop.f32.mrf.mxu0  ;;  %v869_v15 = vpop.f32.mrf.mxu1 }
 0x25d   : > { %909 = vst [vmem:[%s1839_s26 + $0xa8] sm:$0xff] %v691_v23  ;;  %929 = vst [vmem:[%s1839_s26 + $0x148] sm:$0xff] %v875_v50  ;;  %v693_v31 = vadd.f32 %v692_v51, %v1834_v27  ;;  %v870_v24 = vadd.f32 %v869_v15, %v1837_v29 }
 0x25e   : > { %v696_v26 = vpop.f32.mrf.mxu0  ;;  %v1159_v28 = vpop.f32.mrf.mxu1 }
 0x25f   : > { %910 = vst [vmem:[%s1839_s26 + $0xb0] sm:$0xff] %v693_v31  ;;  %926 = vst [vmem:[%s1839_s26 + $0x130] sm:$0xff] %v870_v24  ;;  %v697_v10 = vadd.f32 %v696_v26, %v1832_v25  ;;  %v885_v17 = vadd.f32 %v1159_v28, %v1837_v29 }
 0x260   : > { %v698_v32 = vpop.f32.mrf.mxu0  ;;  %v879_v38 = vpop.f32.mrf.mxu1 }
 0x261   : > { %912 = vst [vmem:[%s1839_s26 + $0xc0] sm:$0xff] %v697_v10  ;;  %935 = vst [vmem:[%s1839_s26 + $0x178] sm:$0xff] %v885_v17  ;;  %v699_v11 = vadd.f32 %v698_v32, %v1834_v27  ;;  %v880_v33 = vadd.f32 %v879_v38, %v1837_v29 }
 0x262   : > { %v702_v36 = vpop.f32.mrf.mxu0 }
 0x263   : > { %913 = vst [vmem:[%s1839_s26 + $0xc8] sm:$0xff] %v699_v11  ;;  %932 = vst [vmem:[%s1839_s26 + $0x160] sm:$0xff] %v880_v33  ;;  %v703_v39 = vadd.f32 %v702_v36, %v1832_v25 }
 0x264   : > { %v704_v45 = vpop.f32.mrf.mxu0 }
 0x265   : > { %915 = vst [vmem:[%s1839_s26 + $0xd8] sm:$0xff] %v703_v39  ;;  %v705_v40 = vadd.f32 %v704_v45, %v1834_v27 }
 0x266   : > { %v708_v41 = vpop.f32.mrf.mxu0 }
 0x267   : > { %916 = vst [vmem:[%s1839_s26 + $0xe0] sm:$0xff] %v705_v40  ;;  %v709_v42 = vadd.f32 %v708_v41, %v1832_v25 }
 0x268   : > { %v710_v43 = vpop.f32.mrf.mxu0 }
 0x269   : > { %918 = vst [vmem:[%s1839_s26 + $0xf0] sm:$0xff] %v709_v42  ;;  %v711_v29 = vadd.f32 %v710_v43, %v1834_v27 }
 0x26a   : > { %v714_v44 = vpop.f32.mrf.mxu0 }
 0x26b   : > { %919 = vst [vmem:[%s1839_s26 + $0xf8] sm:$0xff] %v711_v29  ;;  %v715_v12 = vadd.f32 %v714_v44, %v1832_v25 }
 0x26c   : > { %v716_v47 = vpop.f32.mrf.mxu0 }
 0x26d   : > { %921 = vst [vmem:[%s1839_s26 + $0x108] sm:$0xff] %v715_v12  ;;  %v717_v13 = vadd.f32 %v716_v47, %v1834_v27 }
 0x26e   : > { %v720_v46 = vpop.f32.mrf.mxu0 }
 0x26f   : > { %922 = vst [vmem:[%s1839_s26 + $0x110] sm:$0xff] %v717_v13  ;;  %v721_v48 = vadd.f32 %v720_v46, %v1832_v25 }
 0x270   : > { %v722_v52 = vpop.f32.mrf.mxu0 }
 0x271   : > { %924 = vst [vmem:[%s1839_s26 + $0x120] sm:$0xff] %v721_v48  ;;  %v723_v53 = vadd.f32 %v722_v52, %v1834_v27 }
 0x272   : > { %v726_v55 = vpop.f32.mrf.mxu0 }
 0x273   : > { %925 = vst [vmem:[%s1839_s26 + $0x128] sm:$0xff] %v723_v53  ;;  %v727_v56 = vadd.f32 %v726_v55, %v1832_v25 }
 0x274   : > { %v728_v57 = vpop.f32.mrf.mxu0 }
 0x275   : > { %927 = vst [vmem:[%s1839_s26 + $0x138] sm:$0xff] %v727_v56  ;;  %v729_v14 = vadd.f32 %v728_v57, %v1834_v27 }
 0x276   : > { %v732_v58 = vpop.f32.mrf.mxu0 }
 0x277   : > { %928 = vst [vmem:[%s1839_s26 + $0x140] sm:$0xff] %v729_v14  ;;  %v733_v59 = vadd.f32 %v732_v58, %v1832_v25 }
 0x278   : > { %v734_v54 = vpop.f32.mrf.mxu0 }
 0x279   : > { %930 = vst [vmem:[%s1839_s26 + $0x150] sm:$0xff] %v733_v59  ;;  %v735_v60 = vadd.f32 %v734_v54, %v1834_v27 }
 0x27a   : > { %v738_v2 = vpop.f32.mrf.mxu0 }
 0x27b   : > { %931 = vst [vmem:[%s1839_s26 + $0x158] sm:$0xff] %v735_v60  ;;  %v739_v61 = vadd.f32 %v738_v2, %v1832_v25 }
 0x27c   : > { %v740_v62 = vpop.f32.mrf.mxu0 }
 0x27d   : > { %933 = vst [vmem:[%s1839_s26 + $0x168] sm:$0xff] %v739_v61  ;;  %v741_v63 = vadd.f32 %v740_v62, %v1834_v27 }
 0x27f   : > { %934 = vst [vmem:[%s1839_s26 + $0x170] sm:$0xff] %v741_v63 }
 0x280   : > { %1358 = shalt.err (!%p1355_p5)
}
 0x281   : > { %s1359_s7 = scalar_lea.hbm %s1939_s9, 6144  ;;  %s1363_s26 = scalar_lea.hbm %s2030_s27, 24576 }
 0x282   : > { %p1360_p4 = scmp.ne.s32.totalorder %s1939_s9, %s1359_s7  ;;  %p1364_p9 = scmp.lt.s32.totalorder %s1939_s9, %s2030_s27 }
 0x283   : > { %p1365_p10 = scmp.lt.s32.totalorder %s1363_s26, %s1359_s7 }
 0x284   : > { %p1361_p6 = pnand %p1360_p4, %p1575_p11 }
 0x285   : > { %p1366_p12 = por %p1365_p10, %p1364_p9 }
 0x286   : > { %p1362_p7 = pneg %p1361_p6 }
 0x288   : > { %p1367_p1 = pnand %p1366_p12, %p1362_p7 }
 0x28a   : > { %1370 = shalt.err (!%p1367_p1)
}
 0x28b   : > { %s1455_s17 = smov 384   ;;  %s1456_s22 = smov 24  }
 0x28c   : > { %1169 = dma.vmem_to_hbm [thread:$0]  (%p1575_p11), %s1941_s6, 6144, %s1939_s9, %s937_s13, %s1455_s17, %s1455_s17, %s1456_s22  }
 0x28d PF: > { %s2031_s8 = sld [smem:[#allocation11_spill]]  ;;  %p1186_p8 = scmp.ge.s32.totalorder %s1445_s25, 2 }
 0x28e   : > { %s2032_s10 = sld [smem:[#allocation13_spill]] }
 0x293   : > { %s968_s23 = sand.u32 1, %s2031_s8  }
 0x294   : > { %p2033_p13 = scmp.ne.s32.totalorder %s2032_s10, 0  ;;  %s969_s3 = scalar_lea.sflag [#allocation4], %s968_s23 }
 0x296   : > { %p1180_p2 = pnand %p1186_p8, %p2033_p13 }
 0x298   : > { %p1181_p0 = pneg %p1180_p2 }
 0x29a   : > { %1412 = dma.done.wait (%p1181_p0), %s969_s3, 6144  }
 0x29b   : > { %1414 = vsyncadd (%p1181_p0), %s969_s3, 4294961152  ;;  %s22_s25 = sadd.s32 1, %s1445_s25   ;;  %s2034_s21 = sld [smem:[#allocation12_spill]] }
 0x29c   : > { %p19_p3 = scmp.ge.s32.totalorder %s22_s25, 6   ;;  %s2035_s23 = sld [smem:[#allocation14_spill]] }
 0x29d   : > { %s2036_s18 = smov %s1421_s19  ;;  %s2037_s19 = smov %s1425_s20 }
 0x29e   : > { %s2038_s20 = smov %s1592_s15  ;;  %s2039_s22 = smov %s1441_s24 }
 0x29f   : > { %s2040_s24 = smov %s2046_s16  ;;  %21 = sbr.rel (!%p19_p3) target bundleno = 11 (0xb), region = 89 }
 0x2a4   :  { %974 = vsyncpa [#allocation3], 1 }
 0x2a5   :  { %976 = vsyncpa [#allocation3 + $0x1], 1 }
 0x2a6   :  { %977 = vsyncpa [#allocation6], 1 }
 0x2a7   :  { %978 = vsyncpa [#allocation4], 1 }
 0x2a8   :  { %980 = vsyncpa [#allocation4 + $0x1], 1 }

</bundles_post_ra>
